<compile_context>
chip_gen: v7x
topology: tpu7x:2x2x1
jax: 0.10.0
libtpu: 0.0.40
codegen_flags: <defaults>
</compile_context>

<pallas_src>
import functools

import jax
import jax.numpy as jnp
from jax.experimental import pallas as pl
from jax.experimental.pallas import tpu as pltpu


def _softplus_stable(x):
    # Single-branch numerically-stable softplus (EUP-friendly); agrees with
    # torch.nn.Softplus(beta=1, threshold=20) to within fp32 rounding.
    return jnp.maximum(x, 0.0) + jnp.log1p(jnp.exp(-jnp.abs(x)))


def _softplus_torch(x):
    # Exact torch.nn.Softplus(beta=1, threshold=20) semantics (reference only).
    return jnp.where(x > 20.0, x, jnp.log1p(jnp.exp(jnp.minimum(x, 20.0))))


def _odenet_fused_kernel(*refs, n_layers):
    # refs = [yT_ref, wT_0..wT_{L-1}, ctxT_0..ctxT_{L-1}, o_ref]
    #   yT_ref : (D, tn)        points for one batch, features on sublanes
    #   wT_l   : (Dout_l, Din_l) transposed layer weight (x-part only)
    #   ctxT_l : (Dout_l, 1)     per-batch context projection (+ bias)
    #   o_ref  : (D, tn)         lane-dense output slab
    yT_ref = refs[0]
    w_refs = refs[1:1 + n_layers]
    c_refs = refs[1 + n_layers:1 + 2 * n_layers]
    o_ref = refs[1 + 2 * n_layers]

    h = yT_ref[...].astype(jnp.float32)                       # (D, tn)
    for l in range(n_layers):
        h = jnp.dot(w_refs[l][...], h,
                    preferred_element_type=jnp.float32)       # (Dout_l, tn)
        h = h + c_refs[l][...]                                 # lane-broadcast
        if l < n_layers - 1:
            h = _softplus_stable(h)
    o_ref[...] = h.astype(o_ref.dtype)


def odenet_forward(params, context, y, *, max_tile_n=1024):
    """Fused ODEnet.forward (layer_type='concat', nonlinearity='softplus').

    params : list of (w, b) with w: (dim_in + 1 + dim_c, dim_out), b: (1, dim_out)
    context: (B, 1 + dim_c),  y: (B, N, D)  ->  (B, N, D)
    """
    assert max_tile_n % 128 == 0
    B, N, D = y.shape
    n_layers = len(params)

    # ---- tiny per-layer preprocessing in plain JAX (a few KB) -------------
    wT_list, ctxT_list = [], []
    dim_in = D
    for (w, b) in params:
        w_x = w[:dim_in, :]                        # (dim_in, Dout)
        w_c = w[dim_in:, :]                        # (1 + dim_c, Dout)
        ctx_proj = context @ w_c + b               # (B, Dout)
        wT_list.append(jnp.transpose(w_x))         # (Dout, dim_in)
        ctxT_list.append(ctx_proj[:, :, None])     # (B, Dout, 1)
        dim_in = w.shape[1]

    yT = jnp.transpose(y, (0, 2, 1))               # (B, D, N) layout plumbing

    # ---- tiling ------------------------------------------------------------
    # Full-dim block is always legal; otherwise a multiple-of-128 tile with a
    # masked tail.  All buffers (tile + weights + (32, tn) intermediates) are
    # well under the default scoped-VMEM budget on v5e/v6e/v7x.
    tn = N if N <= max_tile_n else max_tile_n
    grid = (B, pl.cdiv(N, tn))

    in_specs = [pl.BlockSpec((None, D, tn), lambda b, n: (b, 0, n))]
    for wT in wT_list:                             # constant index -> VMEM-resident
        in_specs.append(pl.BlockSpec(tuple(wT.shape), lambda b, n: (0, 0)))
    for cT in ctxT_list:
        in_specs.append(
            pl.BlockSpec((None, cT.shape[1], 1), lambda b, n: (b, 0, 0)))

    kernel = functools.partial(_odenet_fused_kernel, n_layers=n_layers)
    outT = pl.pallas_call(
        kernel,
        out_shape=jax.ShapeDtypeStruct((B, D, N), y.dtype),
        grid_spec=pltpu.PrefetchScalarGridSpec(
            num_scalar_prefetch=0,
            grid=grid,
            in_specs=in_specs,
            out_specs=pl.BlockSpec((None, D, tn), lambda b, n: (b, 0, n)),
        ),
        compiler_params=pltpu.CompilerParams(
            dimension_semantics=("parallel", "parallel")),
    )(yT, *wT_list, *ctxT_list)

    return jnp.transpose(outT, (0, 2, 1))          # (B, N, D)


def init_odenet_params(key, input_dim, hidden_dims, context_dim,
                       dtype=jnp.float32):
    """ConcatLinear stack: Linear(dim_in + 1 + dim_c, dim_out) per layer."""
    params = []
    dim_in = input_dim
    for dim_out in tuple(hidden_dims) + (input_dim,):
        k = dim_in + 1 + context_dim
        key, kw, kb = jax.random.split(key, 3)
        w = jax.random.normal(kw, (k, dim_out), dtype) * 0.1
        b = jax.random.normal(kb, (1, dim_out), dtype) * 0.1
        params.append((w, b))
        dim_in = dim_out
    return params


def odenet_reference(params, context, y):
    """Pure-JAX reference (mirrors the PyTorch forward exactly)."""
    B, N, _ = y.shape
    ctx_b = jnp.broadcast_to(context[:, None, :], (B, N, context.shape[-1]))
    dx = y
    n_layers = len(params)
    for l, (w, b) in enumerate(params):
        xc = jnp.concatenate([dx, ctx_b], axis=-1)
        dx = jnp.einsum('bnk,ko->bno', xc, w) + b[0]
        if l < n_layers - 1:
            dx = _softplus_torch(dx)
    return dx


if __name__ == "__main__":
    # Shapes consistent with the module:
    #   input_shape = (D,) with D=4, hidden_dims=(32, 32), context_dim=8
    #   y: (B, N, D) point set, context: (B, 1 + context_dim)
    B, D = 2, 4
    hidden_dims = (32, 32)
    context_dim = 8

    key = jax.random.PRNGKey(0)
    key, ky, kc, kp = jax.random.split(key, 4)
    params = init_odenet_params(kp, D, hidden_dims, context_dim)

    # N=8: tiny single-tile case; N=3072: exercises the (B, 3) tiled grid.
    for N in (8, 3072):
        ky_n = jax.random.fold_in(ky, N)
        kc_n = jax.random.fold_in(kc, N)
        y = jax.random.normal(ky_n, (B, N, D), jnp.float32)
        context = jax.random.normal(kc_n, (B, 1 + context_dim), jnp.float32)

        out = jax.block_until_ready(odenet_forward(params, context, y))
        ref = odenet_reference(params, context, y)
        assert out.shape == (B, N, D)
        assert jnp.allclose(out, ref, atol=1e-5, rtol=1e-5), (
            f"Pallas output mismatch vs reference at N={N}")

    print("KERNEL_OK")
</pallas_src>

<mosaic_0001>
module attributes {stable_mosaic.version = 11 : i64} {
  func.func @_odenet_fused_kernel(%arg0: i32, %arg1: i32, %arg2: memref<1x4x8xf32, #tpu.memory_space<vmem>>, %arg3: memref<32x4xf32, #tpu.memory_space<vmem>>, %arg4: memref<32x32xf32, #tpu.memory_space<vmem>>, %arg5: memref<4x32xf32, #tpu.memory_space<vmem>>, %arg6: memref<1x32x1xf32, #tpu.memory_space<vmem>>, %arg7: memref<1x32x1xf32, #tpu.memory_space<vmem>>, %arg8: memref<1x4x1xf32, #tpu.memory_space<vmem>>, %arg9: memref<1x4x8xf32, #tpu.memory_space<vmem>>) attributes {dimension_semantics = [#tpu.dimension_semantics<parallel>, #tpu.dimension_semantics<parallel>], iteration_bounds = array<i64: 2, 1>, scalar_prefetch = 0 : i64, scratch_operands = 0 : i64, tpu.core_type = #tpu.core_type<tc>, window_params = [{transform_indices = @transform_0, window_bounds = array<i64: 1, 4, 8>}, {pipeline_mode = #tpu.pipeline_mode<synchronous>, transform_indices = @transform_1, window_bounds = array<i64: 32, 4>}, {pipeline_mode = #tpu.pipeline_mode<synchronous>, transform_indices = @transform_2, window_bounds = array<i64: 32, 32>}, {pipeline_mode = #tpu.pipeline_mode<synchronous>, transform_indices = @transform_3, window_bounds = array<i64: 4, 32>}, {transform_indices = @transform_4, window_bounds = array<i64: 1, 32, 1>}, {transform_indices = @transform_5, window_bounds = array<i64: 1, 32, 1>}, {transform_indices = @transform_6, window_bounds = array<i64: 1, 4, 1>}, {transform_indices = @transform_7, window_bounds = array<i64: 1, 4, 8>}]} {
    %c0 = arith.constant 0 : index
    %c0_0 = arith.constant 0 : index
    %c0_1 = arith.constant 0 : index
    %0 = vector.load %arg2[%c0, %c0_0, %c0_1] : memref<1x4x8xf32, #tpu.memory_space<vmem>>, vector<1x4x8xf32>
    %1 = vector.shape_cast %0 : vector<1x4x8xf32> to vector<4x8xf32>
    %c0_2 = arith.constant 0 : index
    %c0_3 = arith.constant 0 : index
    %2 = vector.load %arg3[%c0_2, %c0_3] : memref<32x4xf32, #tpu.memory_space<vmem>>, vector<32x4xf32>
    %cst = arith.constant dense<0.000000e+00> : vector<32x8xf32>
    %3 = tpu.matmul %2, %1, %cst {dimension_numbers = #tpu.dot_dimension_numbers<[1], [0], [0], [1], [0, 0, 1, 1], [], []>} : vector<32x4xf32>, vector<4x8xf32>, vector<32x8xf32> -> vector<32x8xf32>
    %c0_4 = arith.constant 0 : index
    %c0_5 = arith.constant 0 : index
    %c0_6 = arith.constant 0 : index
    %4 = vector.load %arg6[%c0_4, %c0_5, %c0_6] : memref<1x32x1xf32, #tpu.memory_space<vmem>>, vector<1x32x1xf32>
    %5 = vector.shape_cast %4 : vector<1x32x1xf32> to vector<32x1xf32>
    %6 = vector.broadcast %5 : vector<32x1xf32> to vector<32x8xf32>
    %7 = arith.addf %3, %6 : vector<32x8xf32>
    %cst_7 = arith.constant 0.000000e+00 : f32
    %8 = vector.broadcast %cst_7 : f32 to vector<32x8xf32>
    %9 = arith.maximumf %7, %8 : vector<32x8xf32>
    %10 = math.absf %7 : vector<32x8xf32>
    %cst_8 = arith.constant 0.000000e+00 : f32
    %11 = vector.broadcast %cst_8 : f32 to vector<32x8xf32>
    %12 = arith.subf %11, %10 : vector<32x8xf32>
    %13 = math.exp %12 : vector<32x8xf32>
    %14 = math.log1p %13 : vector<32x8xf32>
    %15 = arith.addf %9, %14 : vector<32x8xf32>
    %c0_9 = arith.constant 0 : index
    %c0_10 = arith.constant 0 : index
    %16 = vector.load %arg4[%c0_9, %c0_10] : memref<32x32xf32, #tpu.memory_space<vmem>>, vector<32x32xf32>
    %cst_11 = arith.constant dense<0.000000e+00> : vector<32x8xf32>
    %17 = tpu.matmul %16, %15, %cst_11 {dimension_numbers = #tpu.dot_dimension_numbers<[1], [0], [0], [1], [0, 0, 1, 1], [], []>} : vector<32x32xf32>, vector<32x8xf32>, vector<32x8xf32> -> vector<32x8xf32>
    %c0_12 = arith.constant 0 : index
    %c0_13 = arith.constant 0 : index
    %c0_14 = arith.constant 0 : index
    %18 = vector.load %arg7[%c0_12, %c0_13, %c0_14] : memref<1x32x1xf32, #tpu.memory_space<vmem>>, vector<1x32x1xf32>
    %19 = vector.shape_cast %18 : vector<1x32x1xf32> to vector<32x1xf32>
    %20 = vector.broadcast %19 : vector<32x1xf32> to vector<32x8xf32>
    %21 = arith.addf %17, %20 : vector<32x8xf32>
    %cst_15 = arith.constant 0.000000e+00 : f32
    %22 = vector.broadcast %cst_15 : f32 to vector<32x8xf32>
    %23 = arith.maximumf %21, %22 : vector<32x8xf32>
    %24 = math.absf %21 : vector<32x8xf32>
    %cst_16 = arith.constant 0.000000e+00 : f32
    %25 = vector.broadcast %cst_16 : f32 to vector<32x8xf32>
    %26 = arith.subf %25, %24 : vector<32x8xf32>
    %27 = math.exp %26 : vector<32x8xf32>
    %28 = math.log1p %27 : vector<32x8xf32>
    %29 = arith.addf %23, %28 : vector<32x8xf32>
    %c0_17 = arith.constant 0 : index
    %c0_18 = arith.constant 0 : index
    %30 = vector.load %arg5[%c0_17, %c0_18] : memref<4x32xf32, #tpu.memory_space<vmem>>, vector<4x32xf32>
    %cst_19 = arith.constant dense<0.000000e+00> : vector<4x8xf32>
    %31 = tpu.matmul %30, %29, %cst_19 {dimension_numbers = #tpu.dot_dimension_numbers<[1], [0], [0], [1], [0, 0, 1, 1], [], []>} : vector<4x32xf32>, vector<32x8xf32>, vector<4x8xf32> -> vector<4x8xf32>
    %c0_20 = arith.constant 0 : index
    %c0_21 = arith.constant 0 : index
    %c0_22 = arith.constant 0 : index
    %32 = vector.load %arg8[%c0_20, %c0_21, %c0_22] : memref<1x4x1xf32, #tpu.memory_space<vmem>>, vector<1x4x1xf32>
    %33 = vector.shape_cast %32 : vector<1x4x1xf32> to vector<4x1xf32>
    %34 = vector.broadcast %33 : vector<4x1xf32> to vector<4x8xf32>
    %35 = arith.addf %31, %34 : vector<4x8xf32>
    %c0_23 = arith.constant 0 : index
    %c0_24 = arith.constant 0 : index
    %c0_25 = arith.constant 0 : index
    %36 = vector.load %arg9[%c0_23, %c0_24, %c0_25] : memref<1x4x8xf32, #tpu.memory_space<vmem>>, vector<1x4x8xf32>
    %37 = vector.shape_cast %36 : vector<1x4x8xf32> to vector<4x8xf32>
    %38 = vector.shape_cast %35 : vector<4x8xf32> to vector<1x4x8xf32>
    tpu.vector_store %arg9[%c0_23, %c0_24, %c0_25], %38 {strides = array<i32>} : memref<1x4x8xf32, #tpu.memory_space<vmem>>, vector<1x4x8xf32>,
    return
  }
  func.func @transform_0(%arg0: i32, %arg1: i32) -> (i32, i32, i32) {
    %c0_i32 = arith.constant 0 : i32
    %c0_i32_0 = arith.constant 0 : i32
    return %arg0, %c0_i32, %arg1 : i32, i32, i32
  }
  func.func @transform_1(%arg0: i32, %arg1: i32) -> (i32, i32) {
    %c0_i32 = arith.constant 0 : i32
    %c0_i32_0 = arith.constant 0 : i32
    %c0_i32_1 = arith.constant 0 : i32
    return %c0_i32, %c0_i32_0 : i32, i32
  }
  func.func @transform_2(%arg0: i32, %arg1: i32) -> (i32, i32) {
    %c0_i32 = arith.constant 0 : i32
    %c0_i32_0 = arith.constant 0 : i32
    %c0_i32_1 = arith.constant 0 : i32
    return %c0_i32, %c0_i32_0 : i32, i32
  }
  func.func @transform_3(%arg0: i32, %arg1: i32) -> (i32, i32) {
    %c0_i32 = arith.constant 0 : i32
    %c0_i32_0 = arith.constant 0 : i32
    %c0_i32_1 = arith.constant 0 : i32
    return %c0_i32, %c0_i32_0 : i32, i32
  }
  func.func @transform_4(%arg0: i32, %arg1: i32) -> (i32, i32, i32) {
    %c0_i32 = arith.constant 0 : i32
    %c0_i32_0 = arith.constant 0 : i32
    %c0_i32_1 = arith.constant 0 : i32
    return %arg0, %c0_i32, %c0_i32_0 : i32, i32, i32
  }
  func.func @transform_5(%arg0: i32, %arg1: i32) -> (i32, i32, i32) {
    %c0_i32 = arith.constant 0 : i32
    %c0_i32_0 = arith.constant 0 : i32
    %c0_i32_1 = arith.constant 0 : i32
    return %arg0, %c0_i32, %c0_i32_0 : i32, i32, i32
  }
  func.func @transform_6(%arg0: i32, %arg1: i32) -> (i32, i32, i32) {
    %c0_i32 = arith.constant 0 : i32
    %c0_i32_0 = arith.constant 0 : i32
    %c0_i32_1 = arith.constant 0 : i32
    return %arg0, %c0_i32, %c0_i32_0 : i32, i32, i32
  }
  func.func @transform_7(%arg0: i32, %arg1: i32) -> (i32, i32, i32) {
    %c0_i32 = arith.constant 0 : i32
    %c0_i32_0 = arith.constant 0 : i32
    return %arg0, %c0_i32, %arg1 : i32, i32, i32
  }
}

</mosaic_0001>

<bundles_post_ra>
// kernel: tpu_custom_call.1
= control target key start
LH: loop header
LB: loop body
LE: loop exit
PB: predicated region body
PF: predicated region fallthrough
CT: control target
= control target key end

     0   :  { %12 = vsyncpa [#allocation3], 0  ;;  %s1435_s0 = inlined_call_operand.vmem [shape: f32[2,4,8], index: 0, kind: input, shape index: {}]   ;;  %s1436_s1 = inlined_call_operand.vmem [shape: f32[32,4], index: 1, kind: input, shape index: {}]   ;;  %s1437_s2 = inlined_call_operand.vmem [shape: f32[32,32], index: 2, kind: input, shape index: {}]   ;;  %s1438_s3 = inlined_call_operand.vmem [shape: f32[4,32], index: 3, kind: input, shape index: {}]   ;;  %s1439_s4 = inlined_call_operand.vmem [shape: f32[2,32,1], index: 4, kind: input, shape index: {}]   ;;  %s1440_s5 = inlined_call_operand.vmem [shape: f32[2,32,1], index: 5, kind: input, shape index: {}]   ;;  %s1441_s6 = inlined_call_operand.vmem [shape: f32[2,4,1], index: 6, kind: input, shape index: {}]   ;;  %s1442_s7 = inlined_call_operand.hbm [shape: f32[2,4,8], index: 7, kind: output, shape index: {}]  }
   0x1   :  { %14 = vsyncpa [#allocation3 + $0x1], 0  ;;  %s1248_s24 = smov 0   ;;  %s1250_s25 = smov 0  }
   0x2   :  { %s1252_s26 = smov 0   ;;  %s1254_s27 = smov 0  }
   0x3   :  { %s1256_s28 = smov 0   ;;  %s1258_s29 = smov 0  }
   0x4 LB: > { %s937_s30 = sadd.s32 4294967295, %s1201_s29   ;;  %s938_s8 = sadd.s32 4294967294, %s1201_s29   ;;  %s1201_s29 = sphi %s1258_s29, %s20_s29   ;;  %s1197_s28 = sphi %s1256_s28, %s1449_s28   ;;  %s1193_s27 = sphi %s1254_s27, %s1448_s27   ;;  %s1189_s26 = sphi %s1252_s26, %s1447_s26   ;;  %s1185_s25 = sphi %s1250_s25, %s1446_s25   ;;  %s1181_s24 = sphi %s1248_s24, %s1445_s24  }
   0x5   : > { %s32_s9 = sadd.s32 1, %s1197_s28  ;;  %s210_s10 = sadd.s32 1, %s1189_s26 }
   0x6   : > { %p34_p0 = scmp.ge.s32.totalorder %s32_s9, 2  ;;  %p220_p1 = scmp.ne.s32.totalorder %s1189_s26, %s1185_s25 }
   0x7   : > { %p221_p2 = scmp.eq.s32.totalorder %s937_s30, 1  ;;  %p226_p3 = scmp.ne.s32.totalorder %s1185_s25, %s1181_s24 }
   0x8   : > { %s1451_s9 = smov (%p34_p0, %s32_s9), 0  ;;  %p227_p5 = scmp.eq.s32.totalorder %s938_s8, 1 }
   0x9   : > { %p1288_p4 = por %p221_p2, %p220_p1  ;;  %s205_s12 = ssub.s32 %s1197_s28, %s1451_s9 }
   0xa   : > { %p941_p6 = scmp.ge.s32.totalorder %s1201_s29, 1  ;;  %p208_p7 = scmp.eq.s32.totalorder %s205_s12, 0 }
   0xb   : > { %p1295_p8 = por %p227_p5, %p226_p3  ;;  %p287_p9 = scmp.lt.s32.totalorder %s1201_s29, 3 }
   0xc   : > { %s1301_s14 = scalar_select %p208_p7, %s1189_s26, %s210_s10  }
   0xd   : > { %p288_p10 = pnand %p941_p6, %p287_p9 }
   0xe   : > { %p335_p11 = scmp.lt.s32.totalorder (!%p288_p10), %s1193_s27, 1  ;;  %v357_v0 = vld [vmem:[%s1436_s1] sm:$0xff] (!%p288_p10)  ;;  %vm385_vm0 = vcmask (!%p288_p10), 31744   ;;  %v1203_v1 = vmov (!%p288_p10), 0   ;;  %vm398_vm1 = vcmask (!%p288_p10), 1043456   ;;  %v358_v3 = vld [vmem:[%s1436_s1 + $0x8] sm:$0xff] (!%p288_p10) }
   0xf   : > { %291 = sbr.rel (%p288_p10) target bundleno = 776 (0x308), region = 48  ;;  %985 = vmatprep.mubr.msk.f32.mxu0 (!%p288_p10), %vm385_vm0, %v357_v0  ;;  %1089 = vset.pattern.permute.xlu0 (!%p288_p10), %v1203_v1  ;;  %v359_v5 = vld [vmem:[%s1436_s1 + $0x10] sm:$0xff] (!%p288_p10)  ;;  %v360_v9 = vld [vmem:[%s1436_s1 + $0x18] sm:$0xff] (!%p288_p10)  ;;  %v547_v15 = vld [vmem:[%s1437_s2] sm:$0xff] (!%p288_p10)  ;;  %vm575_vm2 = vcmask (!%p288_p10), 261120   ;;  %vm1205_vm7 = vmmov (!%p288_p10), 0  }
  0x10   : > { %1090 = vset.pattern.permute.xlu1 (!%p288_p10), %v1203_v1  ;;  %999 = vmatprep.mubr.msk.f32.mxu1 (!%p288_p10), %vm575_vm2, %v547_v15  ;;  %s332_s30 = sand.u32 (!%p288_p10), 1, %s1185_s25   ;;  %vm813_vm12 = vcmask (!%p288_p10), 60416   ;;  %s1207_s20 = smov (!%p288_p10), [#allocation2]  }
  0x11   : > { %s942_s10 = sshll.u32 (!%p288_p10), %s332_s30, 2 }
  0x16   : > { %s1309_s17 = scalar_select %p335_p11, %s1193_s27, 1 }
  0x18   : > { %s943_s18 = sshll.u32 %s1309_s17, 2  ;;  %s963_s19 = sshll.u32 %s1309_s17, 5 }
  0x19   : > { %s341_s22 = scalar_lea.vmem %s1435_s0, %s943_s18  ;;  %s346_s8 = scalar_lea.vmem %s1439_s4, %s963_s19 }
  0x1a   : > { %v356_v2 = vld [vmem:[%s341_s22] sm:$0xf]  ;;  %v363_v6 = vld [vmem:[%s346_s8 + $0x10] sm:$0xff]  ;;  %v362_v7 = vld [vmem:[%s346_s8 + $0x8] sm:$0xff]  ;;  %s351_s21 = scalar_lea.vmem %s1440_s5, %s963_s19  ;;  %s355_s19 = scalar_lea.vmem %s1441_s6, %s943_s18 }
  0x1b   : > { %v361_v4 = vld [vmem:[%s346_s8] sm:$0xff]  ;;  %983 = vmatprep.subr.msk.mxu0 %vm398_vm1, %v356_v2  ;;  %377 = vperm.xlu1 %1090, %v363_v6   ;;  %v364_v8 = vld [vmem:[%s346_s8 + $0x18] sm:$0xff]  ;;  %v552_v11 = vld [vmem:[%s351_s21 + $0x8] sm:$0xff]  ;;  %s334_s8 = scalar_lea.vmem [#allocation2], %s942_s10  ;;  %s816_s17 = scalar_lea.sflag [#allocation3], %s332_s30 }
  0x1c   : > { %367 = vperm.xlu0 %1089, %v361_v4   ;;  %984 = vmatpush3.msk.msra.mxu0 %vm398_vm1, %v356_v2  ;;  %v551_v10 = vld [vmem:[%s351_s21] sm:$0xff]  ;;  %v553_v12 = vld [vmem:[%s351_s21 + $0x10] sm:$0xff]  ;;  %v554_v13 = vld [vmem:[%s351_s21 + $0x18] sm:$0xff]  ;;  %s830_s12 = sshll.u32 %s334_s8, 4  ;;  %s1127_s21 = sshll.u32 %s1207_s20, 4  ;;  %s1390_s12 = int_to_ptr.vmem [resolvable:$true] %s830_s12  ;;  %s1128_s21 = int_to_ptr.vmem [resolvable:$false] %s1127_s21 }
  0x1d   : > { %986 = vmatmul.mubr.msk.f32.vlgmr.msra.gmra.mrb[0].mxu0 %vm385_vm0, %v358_v3  ;;  %v734_v14 = vld [vmem:[%s355_s19] sm:$0xf]  ;;  %s960_s19 = sshll.u32 %s1193_s27, 6  ;;  %s1123_s27 = scalar_lea.vmem %s1390_s12, 64 }
  0x1e   : > { %988 = vmatprep.mubr.msk.f32.mxu0 %vm385_vm0, %v359_v5  ;;  %s1388_s16 = scalar_lea.hbm %s1442_s7, %s960_s19  ;;  %p1124_p12 = scmp.ne.s32.totalorder %s1390_s12, %s1123_s27 }
  0x1f   : > { %382 = vperm.xlu1 %1090, %v364_v8   ;;  %s1129_s22 = scalar_lea.vmem %s1128_s21, 128  ;;  %p1130_p1 = scmp.lt.s32.totalorder %s1390_s12, %s1128_s21 }
  0x20   : > { %372 = vperm.xlu0 %1089, %v362_v7   ;;  %p1125_p13 = pnand %p1124_p12, %p1288_p4  ;;  %p1131_p2 = scmp.lt.s32.totalorder %s1129_s22, %s1123_s27 }
  0x21   : > { %989 = vmatmul.mubr.msk.f32.gmra.mrb[2].mxu0 %vm385_vm0, %v360_v9 }
  0x22   : > { %p1126_p0 = pneg %p1125_p13  ;;  %p1132_p3 = por %p1131_p2, %p1130_p1 }
  0x23   : > { %562 = vperm.xlu1 %1090, %v552_v11  }
  0x24   : > { %557 = vperm.xlu0 %1089, %v551_v10   ;;  %p1133_p5 = pnand %p1132_p3, %p1126_p0 }
  0x27   : > { %572 = vperm.xlu1 %1090, %v554_v13  }
  0x28   : > { %567 = vperm.xlu0 %1089, %v553_v12  }
  0x2c   : > { %737 = vperm.xlu0 %1089, %v734_v14  }
  0x9a   : > { %v378_v17 = vpop.permute.xlu1 %377 }
  0x9b   : > { %v368_v16 = vpop.permute.xlu0 %367 }
  0x9e   : > { %v383_v24 = vpop.permute.xlu1 %382 }
  0x9f   : > { %v373_v18 = vpop.permute.xlu0 %372 }
  0xf0   : > { %v987_v19 = vpop.f32.mrb[0].mxu0 }
  0xf1   : > { %v474_v20 = vadd.f32 %v987_v19, %v373_v18  ;;  %v468_v21 = vpop.f32.mrb[1].mxu0 }
  0xf2   : > { %v1341_v22 = vadd.f32 %v468_v21, %v368_v16 }
  0xf3   : > { %v492_v23 = vand.u32 2147483647, %v474_v20  ;;  %v488_v57 = vmax.f32 %v474_v20, 0.0 }
  0xf4   : > { %v491_v25 = vand.u32 2147483647, %v1341_v22  ;;  %v990_v26 = vpop.f32.mrb[2].mxu0  ;;  %v487_v2 = vmax.f32 %v1341_v22, 0.0  ;;  %v548_v22 = vld [vmem:[%s1437_s2 + $0x8] sm:$0xff] }
  0xf5   : > { %v496_v27 = vsub.f32 0.0, %v492_v23  ;;  %v1344_v28 = vadd.f32 %v990_v26, %v383_v24  ;;  %v478_v29 = vpop.f32.mrb[3].mxu0  ;;  %v549_v23 = vld [vmem:[%s1437_s2 + $0x10] sm:$0xff]  ;;  %v550_v24 = vld [vmem:[%s1437_s2 + $0x18] sm:$0xff]  ;;  %v1206_v26 = vmov 0.0  }
  0xf6   : > { %v495_v30 = vsub.f32 0.0, %v491_v25  ;;  %v1346_v31 = vadd.f32 %v478_v29, %v378_v17  ;;  %v1204_v25 = vmov 0.0|0.0   ;;  %1013 = vmatprep.mubr.msk.f32.mxu0 %vm1205_vm7, %v1206_v26 }
  0xf7   : > { %v501_v32 = vmul.f32 1.442695, %v496_v27  ;;  %v494_v33 = vand.u32 2147483647, %v1344_v28  ;;  %v490_v12 = vmax.f32 %v1344_v28, 0.0  ;;  %1024 = vmatprep.subr.bf16.mxu0 %v1204_v25  ;;  %v563_v27 = vpop.permute.xlu1 %562  ;;  %v558_v28 = vpop.permute.xlu0 %557 }
  0xf8   : > { %v499_v34 = vmul.f32 1.442695, %v495_v30  ;;  %v493_v35 = vand.u32 2147483647, %v1346_v31  ;;  %v489_v16 = vmax.f32 %v1346_v31, 0.0 }
  0xf9   : > { %1091 = vpow2.f32 %v501_v32  ;;  %v498_v36 = vsub.f32 0.0, %v494_v33 }
  0xfa   : > { %1093 = vpow2.f32 %v499_v34  ;;  %v497_v37 = vsub.f32 0.0, %v493_v35 }
  0xfb   : > { %v505_v38 = vmul.f32 1.442695, %v498_v36  ;;  %v573_v34 = vpop.permute.xlu1 %572 }
  0xfc   : > { %v503_v39 = vmul.f32 1.442695, %v497_v37  ;;  %v568_v37 = vpop.permute.xlu0 %567 }
  0xfd   : > { %1095 = vpow2.f32 %v505_v38 }
  0xfe   : > { %1097 = vpow2.f32 %v503_v39 }
 0x103   : > { %v1092_v40 = vpop.eup %1091 }
 0x104   : > { %v1094_v41 = vpop.eup %1093  ;;  %v516_v42 = vadd.f32 1.0, %v1092_v40  ;;  %v519_v48 = vmul.f32 -0.5, %v1092_v40  ;;  %v522_v52 = vand.u32 2147483647, %v1092_v40 }
 0x105   : > { %v507_v43 = vadd.f32 1.0, %v1094_v41  ;;  %v510_v49 = vmul.f32 -0.5, %v1094_v41  ;;  %v513_v55 = vand.u32 2147483647, %v1094_v41 }
 0x106   : > { %1099 = vlog2.f32 %v516_v42  ;;  %v520_v51 = vadd.f32 1.0, %v519_v48  ;;  %vm523_vm3 = vcmp.lt.f32.partialorder %v522_v52, 0.0004427343 }
 0x107   : > { %v1096_v44 = vpop.eup %1095  ;;  %1101 = vlog2.f32 %v507_v43  ;;  %v511_v54 = vadd.f32 1.0, %v510_v49  ;;  %vm514_vm4 = vcmp.lt.f32.partialorder %v513_v55, 0.0004427343 }
 0x108   : > { %v1098_v45 = vpop.eup %1097  ;;  %v534_v46 = vadd.f32 1.0, %v1096_v44  ;;  %v537_v50 = vmul.f32 -0.5, %v1096_v44  ;;  %v521_v61 = vmul.f32 %v1092_v40, %v520_v51  ;;  %v540_v62 = vand.u32 2147483647, %v1096_v44 }
 0x109   : > { %v525_v47 = vadd.f32 1.0, %v1098_v45  ;;  %v528_v53 = vmul.f32 -0.5, %v1098_v45  ;;  %v512_v1 = vmul.f32 %v1094_v41, %v511_v54  ;;  %v531_v3 = vand.u32 2147483647, %v1098_v45 }
 0x10a   : > { %1103 = vlog2.f32 %v534_v46  ;;  %v538_v59 = vadd.f32 1.0, %v537_v50  ;;  %vm541_vm5 = vcmp.lt.f32.partialorder %v540_v62, 0.0004427343 }
 0x10b   : > { %1105 = vlog2.f32 %v525_v47  ;;  %v529_v63 = vadd.f32 1.0, %v528_v53  ;;  %vm532_vm6 = vcmp.lt.f32.partialorder %v531_v3, 0.0004427343 }
 0x10c   : > { %v539_v10 = vmul.f32 %v1096_v44, %v538_v59 }
 0x10d   : > { %v530_v14 = vmul.f32 %v1098_v45, %v529_v63 }
 0x110   : > { %v1100_v56 = vpop.eup %1099 }
 0x111   : > { %v1102_v58 = vpop.eup %1101  ;;  %v518_v60 = vmul.f32 0.6931472, %v1100_v56 }
 0x112   : > { %v509_v0 = vmul.f32 0.6931472, %v1102_v58 }
 0x113   : > { %v524_v4 = vsel %vm523_vm3, %v521_v61, %v518_v60 }
 0x114   : > { %v1104_v5 = vpop.eup %1103  ;;  %v515_v6 = vsel %vm514_vm4, %v512_v1, %v509_v0  ;;  %v544_v7 = vadd.f32 %v524_v4, %v488_v57 }
 0x115   : > { %v1106_v8 = vpop.eup %1105  ;;  %v536_v9 = vmul.f32 0.6931472, %v1104_v5  ;;  %v543_v11 = vadd.f32 %v515_v6, %v487_v2 }
 0x116   : > { %v527_v13 = vmul.f32 0.6931472, %v1106_v8 }
 0x117   : > { %v542_v15 = vsel %vm541_vm5, %v539_v10, %v536_v9  ;;  %v1016_v17 = vpack.c.bf16 %v544_v7, %v543_v11 }
 0x118   : > { %v546_v18 = vadd.f32 %v542_v15, %v490_v12  ;;  %v533_v19 = vsel %vm532_vm6, %v530_v14, %v527_v13 }
 0x119   : > { %v545_v20 = vadd.f32 %v533_v19, %v489_v16  ;;  %1017 = vmatprep.subr.bf16.mxu1 %v1016_v17 }
 0x11a   : > { %1019 = vmatpush3.bf16.msra.mxu1 %v1016_v17 }
 0x11b   : > { %v1020_v21 = vpack.c.bf16 %v546_v18, %v545_v20 }
 0x11d   : > { %1021 = vmatprep.subr.bf16.mxu1 %v1020_v21 }
 0x11e   : > { %1023 = vmatpush3.bf16.msra.mxu1 %v1020_v21 }
 0x121   : > { %1000 = vmatmul.mubr.msk.f32.vlgmr.msra.gmra.mrb[0].mxu1 %vm575_vm2, %v548_v22 }
 0x122   : > { %1002 = vmatprep.mubr.msk.f32.mxu1 %vm575_vm2, %v549_v23 }
 0x125   : > { %1003 = vmatmul.mubr.msk.f32.gmra.mrb[2].mxu1 %vm575_vm2, %v550_v24 }
 0x1f4   : > { %v1001_v29 = vpop.f32.mrb[0].mxu1 }
 0x1f5   : > { %v660_v30 = vadd.f32 %v1001_v29, %v563_v27  ;;  %v654_v31 = vpop.f32.mrb[1].mxu1 }
 0x1f6   : > { %v1366_v32 = vadd.f32 %v654_v31, %v558_v28 }
 0x1f7   : > { %v678_v33 = vand.u32 2147483647, %v660_v30  ;;  %v674_v4 = vmax.f32 %v660_v30, 0.0 }
 0x1f8   : > { %v677_v35 = vand.u32 2147483647, %v1366_v32  ;;  %v1004_v36 = vpop.f32.mrb[2].mxu1  ;;  %v673_v14 = vmax.f32 %v1366_v32, 0.0 }
 0x1f9   : > { %v682_v38 = vsub.f32 0.0, %v678_v33  ;;  %v1369_v39 = vadd.f32 %v1004_v36, %v573_v34  ;;  %v664_v40 = vpop.f32.mrb[3].mxu1  ;;  %v733_v34 = vld [vmem:[%s1438_s3] sm:$0xf] }
 0x1fa   : > { %v681_v41 = vsub.f32 0.0, %v677_v35  ;;  %v1371_v42 = vadd.f32 %v664_v40, %v568_v37  ;;  %v738_v35 = vpop.permute.xlu0 %737 }
 0x1fb   : > { %v687_v43 = vmul.f32 1.442695, %v682_v38  ;;  %v680_v44 = vand.u32 2147483647, %v1369_v39  ;;  %v676_v23 = vmax.f32 %v1369_v39, 0.0 }
 0x1fc   : > { %v685_v45 = vmul.f32 1.442695, %v681_v41  ;;  %v679_v46 = vand.u32 2147483647, %v1371_v42  ;;  %v675_v29 = vmax.f32 %v1371_v42, 0.0 }
 0x1fd   : > { %1107 = vpow2.f32 %v687_v43  ;;  %v684_v47 = vsub.f32 0.0, %v680_v44 }
 0x1fe   : > { %1109 = vpow2.f32 %v685_v45  ;;  %v683_v48 = vsub.f32 0.0, %v679_v46 }
 0x1ff   : > { %v691_v49 = vmul.f32 1.442695, %v684_v47 }
 0x200   : > { %v689_v50 = vmul.f32 1.442695, %v683_v48 }
 0x201   : > { %1111 = vpow2.f32 %v691_v49 }
 0x202   : > { %1113 = vpow2.f32 %v689_v50 }
 0x207   : > { %v1108_v51 = vpop.eup %1107 }
 0x208   : > { %v1110_v52 = vpop.eup %1109  ;;  %v702_v53 = vadd.f32 1.0, %v1108_v51  ;;  %v705_v58 = vmul.f32 -0.5, %v1108_v51  ;;  %v708_v62 = vand.u32 2147483647, %v1108_v51 }
 0x209   : > { %v693_v54 = vadd.f32 1.0, %v1110_v52  ;;  %v696_v60 = vmul.f32 -0.5, %v1110_v52  ;;  %v699_v2 = vand.u32 2147483647, %v1110_v52 }
 0x20a   : > { %1115 = vlog2.f32 %v702_v53  ;;  %v706_v61 = vadd.f32 1.0, %v705_v58  ;;  %vm709_vm8 = vcmp.lt.f32.partialorder %v708_v62, 0.0004427343 }
 0x20b   : > { %v1112_v55 = vpop.eup %1111  ;;  %1117 = vlog2.f32 %v693_v54  ;;  %v697_v0 = vadd.f32 1.0, %v696_v60  ;;  %vm700_vm9 = vcmp.lt.f32.partialorder %v699_v2, 0.0004427343 }
 0x20c   : > { %v1114_v56 = vpop.eup %1113  ;;  %v720_v57 = vadd.f32 1.0, %v1112_v55  ;;  %v723_v63 = vmul.f32 -0.5, %v1112_v55  ;;  %v707_v7 = vmul.f32 %v1108_v51, %v706_v61  ;;  %v726_v11 = vand.u32 2147483647, %v1112_v55 }
 0x20d   : > { %v711_v59 = vadd.f32 1.0, %v1114_v56  ;;  %v714_v1 = vmul.f32 -0.5, %v1114_v56  ;;  %v698_v10 = vmul.f32 %v1110_v52, %v697_v0  ;;  %v717_v15 = vand.u32 2147483647, %v1114_v56 }
 0x20e   : > { %1119 = vlog2.f32 %v720_v57  ;;  %v724_v8 = vadd.f32 1.0, %v723_v63  ;;  %vm727_vm10 = vcmp.lt.f32.partialorder %v726_v11, 0.0004427343 }
 0x20f   : > { %1121 = vlog2.f32 %v711_v59  ;;  %v715_v12 = vadd.f32 1.0, %v714_v1  ;;  %vm718_vm11 = vcmp.lt.f32.partialorder %v717_v15, 0.0004427343 }
 0x210   : > { %v725_v22 = vmul.f32 %v1112_v55, %v724_v8 }
 0x211   : > { %v716_v26 = vmul.f32 %v1114_v56, %v715_v12 }
 0x214   : > { %v1116_v3 = vpop.eup %1115 }
 0x215   : > { %v1118_v5 = vpop.eup %1117  ;;  %v704_v6 = vmul.f32 0.6931472, %v1116_v3 }
 0x216   : > { %v695_v9 = vmul.f32 0.6931472, %v1118_v5 }
 0x217   : > { %v710_v13 = vsel %vm709_vm8, %v707_v7, %v704_v6 }
 0x218   : > { %v1120_v16 = vpop.eup %1119  ;;  %v730_v17 = vadd.f32 %v710_v13, %v674_v4  ;;  %v701_v18 = vsel %vm700_vm9, %v698_v10, %v695_v9 }
 0x219   : > { %v1122_v19 = vpop.eup %1121  ;;  %v729_v20 = vadd.f32 %v701_v18, %v673_v14  ;;  %v722_v21 = vmul.f32 0.6931472, %v1120_v16 }
 0x21a   : > { %v713_v24 = vmul.f32 0.6931472, %v1122_v19 }
 0x21b   : > { %v1025_v27 = vpack.c.bf16 %v730_v17, %v729_v20  ;;  %v728_v28 = vsel %vm727_vm10, %v725_v22, %v722_v21 }
 0x21c   : > { %v732_v30 = vadd.f32 %v728_v28, %v676_v23  ;;  %v719_v31 = vsel %vm718_vm11, %v716_v26, %v713_v24 }
 0x21d   : > { %v731_v32 = vadd.f32 %v719_v31, %v675_v29  ;;  %1026 = vmatpush3.bf16.msra.mxu0 %v1025_v27 }
 0x21e   : > { %1027 = vmatprep.subr.bf16.mxu0 %v1204_v25 }
 0x21f   : > { %v1028_v33 = vpack.c.bf16 %v732_v30, %v731_v32 }
 0x221   : > { %1029 = vmatpush3.bf16.msra.mxu0 %v1028_v33 }
 0x224   : > { %1014 = vmatmul.mubr.msk.f32.vlgmr.msra.gmra.mrb[4].mxu0 %vm575_vm2, %v733_v34 }
 0x2f7   : > { %v809_v36 = vpop.f32.mrb[4].mxu0 }
 0x2f8   : > { %v810_v37 = vadd.f32 %v809_v36, %v738_v35  ;;  %v1015_v38 = vpop.f32.mrb[5].mxu0 }
 0x2fa   : > { %814 = vst.msk [vmem:[%s334_s8] sm:$0xf] %vm813_vm12, %v810_v37 }
 0x2fb   : > { %1136 = shalt.err (!%p1133_p5)
}
 0x2fc   : > { %s1137_s23 = scalar_lea.hbm %s1388_s16, 64  ;;  %s1141_s19 = scalar_lea.hbm %s1442_s7, 128 }
 0x2fd   : > { %p1138_p6 = scmp.ne.s32.totalorder %s1388_s16, %s1137_s23  ;;  %p1142_p10 = scmp.lt.u32.totalorder %s1388_s16, %s1442_s7 }
 0x2fe   : > { %p1143_p11 = scmp.lt.u32.totalorder %s1141_s19, %s1137_s23  ;;  %p1145_p13 = scmp.lt.u32.totalorder %s1137_s23, %s1388_s16 }
 0x2ff   : > { %p1139_p7 = pnand %p1138_p6, %p1288_p4 }
 0x300   : > { %p1144_p12 = por %p1143_p11, %p1142_p10 }
 0x301   : > { %p1140_p9 = pneg %p1139_p7 }
 0x302   : > { %p1146_p0 = por %p1145_p13, %p1144_p12 }
 0x304   : > { %p1147_p1 = pnand %p1146_p0, %p1140_p9 }
 0x306   : > { %1150 = shalt.err (!%p1147_p1)
}
 0x307   : > { %1030 = dma.vmem_to_hbm [thread:$0]  (%p1288_p4), %s1390_s12, 64, %s1388_s16, %s816_s17  }
 0x308 PF: > { %p1036_p2 = scmp.ge.s32.totalorder %s1201_s29, 2  ;;  %s842_s15 = sand.u32 1, %s1181_s24  }
 0x309   : > { %s843_s27 = scalar_lea.sflag [#allocation3], %s842_s15 }
 0x30a   : > { %p1033_p3 = pnand %p1036_p2, %p1295_p8 }
 0x30c   : > { %1176 = dma.done.wait (!%p1033_p3), %s843_s27, 64  }
 0x30d   : > { %1178 = vsyncadd (!%p1033_p3), %s843_s27, 4294967232  ;;  %s20_s29 = sadd.s32 1, %s1201_s29   ;;  %s1445_s24 = smov %s1185_s25 }
 0x30e   : > { %p17_p5 = scmp.ge.s32.totalorder %s20_s29, 4   ;;  %s1446_s25 = smov %s1189_s26 }
 0x30f   : > { %s1447_s26 = smov %s1301_s14  ;;  %s1448_s27 = smov %s1197_s28 }
 0x310   : > { %s1449_s28 = smov %s1451_s9  ;;  %19 = sbr.rel (!%p17_p5) target bundleno = 4 (0x4), region = 92 }
 0x317   :  { %848 = vsyncpa [#allocation3], 1 }
 0x318   :  { %850 = vsyncpa [#allocation3 + $0x1], 1 }

</bundles_post_ra>
